<compile_context>
chip_gen: v7x
topology: tpu7x:2x2x1
jax: 0.10.0
libtpu: 0.0.40
codegen_flags: <defaults>
</compile_context>

<pallas_src>
import functools

import jax
import jax.numpy as jnp
from jax.experimental import pallas as pl
from jax.experimental.pallas import tpu as pltpu


def _knn_kernel(x_ref, tT_ref, tnorm_ref, onehot_ref, proba_ref, pred_ref,
                *, n_neighbors):
    x = x_ref[...]             # (TB, D)  f32 query tile
    tT = tT_ref[...]           # (D, N)   f32 train data, transposed
    t_norm2 = tnorm_ref[...]   # (1, N)   f32 precomputed ||t||^2
    onehot = onehot_ref[...]   # (N, C_PAD) f32 label one-hot (lane-padded)

    TB = x.shape[0]
    N = tT.shape[1]
    C_PAD = onehot.shape[1]

    # ---- 1) squared minkowski(p=2) distances via Gram form (MXU) ------------
    # NOTE: ordering identical to the direct |x-t|^2 form except at exact
    # floating-point ties; with uniform weights this only matters for ties.
    x_norm2 = jnp.sum(x * x, axis=1, keepdims=True)                    # (TB, 1)
    gram = jnp.dot(x, tT, preferred_element_type=jnp.float32)          # (TB, N) MXU
    dist = x_norm2 + t_norm2 - 2.0 * gram                              # (TB, N)

    lane_iota = jax.lax.broadcasted_iota(jnp.int32, (TB, N), 1)

    # ---- 2) k-smallest: accumulate a selection mask (k ones per row) --------
    sel_sum = jnp.zeros((TB, N), jnp.float32)
    for _ in range(n_neighbors):                         # k is small & static
        mval = jnp.min(dist, axis=1, keepdims=True)                    # (TB, 1)
        # first index achieving the minimum (torch first-occurrence semantics)
        first_idx = jnp.min(jnp.where(dist == mval, lane_iota, N),
                            axis=1, keepdims=True)                     # (TB, 1)
        first_mask = lane_iota == first_idx                            # (TB, N)
        sel_sum = sel_sum + first_mask.astype(jnp.float32)
        dist = jnp.where(first_mask, jnp.inf, dist)      # exclude chosen nbr

    # ---- 3) uniform-weight class votes: ONE matmul after the loop -----------
    votes = jnp.dot(sel_sum, onehot,
                    preferred_element_type=jnp.float32)                # (TB, C_PAD)

    # ---- 4) normalize to probabilities (guard sum==0 -> 1, as in module) ----
    psum = jnp.sum(votes, axis=1, keepdims=True)
    psum = jnp.where(psum == 0.0, jnp.float32(1.0), psum)
    proba = votes * pl.reciprocal(psum, approx=True)
    proba_ref[...] = proba                                             # lane-dense

    # ---- 5) argmax over classes (first occurrence on ties) ------------------
    c_iota = jax.lax.broadcasted_iota(jnp.int32, (TB, C_PAD), 1)
    pmax = jnp.max(proba, axis=1, keepdims=True)
    pred = jnp.min(jnp.where(proba == pmax, c_iota, C_PAD),
                   axis=1, keepdims=True)
    pred_ref[...] = pred.astype(jnp.int32)


def knn_forward(x, train_data, train_labels, n_neighbors, n_classes):
    """Pallas KNeighbors classifier forward (uniform weights, minkowski p=2).

    x:            (B, D) float32 query batch
    train_data:   (N, D) float32
    train_labels: (N,)   int32 class ids in [0, n_classes)
    returns (preds (B,) int32, proba (B, n_classes) float32)
    """
    B, D = x.shape
    N = train_data.shape[0]

    C_PAD = 128                      # lane-dense proba slab; sliced outside
    assert n_classes <= C_PAD

    # Batch tiling: TB rows per grid step ("parallel" axis -> megacore on v7x).
    TB = B if B <= 128 else 128
    B_pad = pl.cdiv(B, TB) * TB
    if B_pad != B:
        x = jnp.pad(x, ((0, B_pad - B), (0, 0)))

    # Wrapper-side glue (computed once, not per batch tile):
    train_T = train_data.T                                               # (D, N)
    t_norm2 = jnp.sum(train_data * train_data, axis=1, keepdims=True).T  # (1, N)
    onehot = jax.nn.one_hot(train_labels, C_PAD, dtype=jnp.float32)      # (N, C_PAD)

    kernel = functools.partial(_knn_kernel, n_neighbors=n_neighbors)
    proba_pad, pred = pl.pallas_call(
        kernel,
        out_shape=(
            jax.ShapeDtypeStruct((B_pad, C_PAD), jnp.float32),
            jax.ShapeDtypeStruct((B_pad, 1), jnp.int32),
        ),
        grid=(B_pad // TB,),
        in_specs=[
            pl.BlockSpec((TB, D), lambda i: (i, 0)),      # query tile (pipelined)
            pl.BlockSpec((D, N), lambda i: (0, 0)),       # train data (resident)
            pl.BlockSpec((1, N), lambda i: (0, 0)),       # ||t||^2   (resident)
            pl.BlockSpec((N, C_PAD), lambda i: (0, 0)),   # label one-hot (resident)
        ],
        out_specs=(
            pl.BlockSpec((TB, C_PAD), lambda i: (i, 0)),
            pl.BlockSpec((TB, 1), lambda i: (i, 0)),
        ),
        compiler_params=pltpu.CompilerParams(
            dimension_semantics=("parallel",)),
    )(x, train_T, t_norm2, onehot)

    return pred[:B, 0], proba_pad[:B, :n_classes]


def _reference(x, train_data, train_labels, n_neighbors, n_classes):
    """Pure-JAX reference mirroring the PyTorch module (uniform weights)."""
    dist = jnp.sqrt(jnp.sum((x[:, None, :] - train_data[None, :, :]) ** 2, axis=-1))
    _, idx = jax.lax.top_k(-dist, n_neighbors)                     # smallest k
    nbr_labels = train_labels[idx]                                 # (B, k)
    votes = jnp.zeros((x.shape[0], n_classes), jnp.float32)
    votes = jax.vmap(lambda v, l: v.at[l].add(1.0))(votes, nbr_labels)
    psum = jnp.sum(votes, axis=1, keepdims=True)
    psum = jnp.where(psum == 0.0, 1.0, psum)
    proba = votes / psum
    return jnp.argmax(proba, axis=1).astype(jnp.int32), proba


if __name__ == "__main__":
    key = jax.random.PRNGKey(0)
    k_x, k_t, k_l = jax.random.split(key, 3)

    B, D, N, C, K = 8, 32, 64, 4, 5   # batch, features, train points, classes, k

    x = jax.random.normal(k_x, (B, D), dtype=jnp.float32)
    train_data = jax.random.normal(k_t, (N, D), dtype=jnp.float32)
    train_labels = jax.random.randint(k_l, (N,), 0, C, dtype=jnp.int32)

    preds, proba = knn_forward(x, train_data, train_labels, K, C)
    jax.block_until_ready((preds, proba))

    ref_preds, ref_proba = _reference(x, train_data, train_labels, K, C)
    # approx reciprocal in the kernel -> allow a few mantissa bits of slack;
    # any wrong vote count would show up as an error of >= 1/K = 0.2.
    assert jnp.allclose(proba, ref_proba, atol=5e-3), "proba mismatch"
    assert jnp.array_equal(preds, ref_preds), "pred mismatch"

    print("KERNEL_OK")
</pallas_src>

<mosaic_0001>
module attributes {stable_mosaic.version = 11 : i64} {
  func.func @_knn_kernel(%arg0: i32, %arg1: memref<8x32xf32, #tpu.memory_space<vmem>>, %arg2: memref<32x64xf32, #tpu.memory_space<vmem>>, %arg3: memref<1x64xf32, #tpu.memory_space<vmem>>, %arg4: memref<64x128xf32, #tpu.memory_space<vmem>>, %arg5: memref<8x128xf32, #tpu.memory_space<vmem>>, %arg6: memref<8x1xi32, #tpu.memory_space<vmem>>) attributes {dimension_semantics = [#tpu.dimension_semantics<parallel>], iteration_bounds = array<i64: 1>, scalar_prefetch = 0 : i64, scratch_operands = 0 : i64, tpu.core_type = #tpu.core_type<tc>, window_params = [{transform_indices = @transform_0, window_bounds = array<i64: 8, 32>}, {pipeline_mode = #tpu.pipeline_mode<synchronous>, transform_indices = @transform_1, window_bounds = array<i64: 32, 64>}, {pipeline_mode = #tpu.pipeline_mode<synchronous>, transform_indices = @transform_2, window_bounds = array<i64: 1, 64>}, {pipeline_mode = #tpu.pipeline_mode<synchronous>, transform_indices = @transform_3, window_bounds = array<i64: 64, 128>}, {transform_indices = @transform_4, window_bounds = array<i64: 8, 128>}, {transform_indices = @transform_5, window_bounds = array<i64: 8, 1>}]} {
    %c0 = arith.constant 0 : index
    %c0_0 = arith.constant 0 : index
    %0 = vector.load %arg1[%c0, %c0_0] : memref<8x32xf32, #tpu.memory_space<vmem>>, vector<8x32xf32>
    %c0_1 = arith.constant 0 : index
    %c0_2 = arith.constant 0 : index
    %1 = vector.load %arg2[%c0_1, %c0_2] : memref<32x64xf32, #tpu.memory_space<vmem>>, vector<32x64xf32>
    %c0_3 = arith.constant 0 : index
    %c0_4 = arith.constant 0 : index
    %2 = vector.load %arg3[%c0_3, %c0_4] : memref<1x64xf32, #tpu.memory_space<vmem>>, vector<1x64xf32>
    %c0_5 = arith.constant 0 : index
    %c0_6 = arith.constant 0 : index
    %3 = vector.load %arg4[%c0_5, %c0_6] : memref<64x128xf32, #tpu.memory_space<vmem>>, vector<64x128xf32>
    %4 = arith.mulf %0, %0 : vector<8x32xf32>
    %cst = arith.constant dense<0.000000e+00> : vector<8xf32>
    %5 = vector.multi_reduction <add>, %4, %cst [1] : vector<8x32xf32> to vector<8xf32>
    %6 = vector.shape_cast %5 : vector<8xf32> to vector<8x1xf32>
    %cst_7 = arith.constant dense<0.000000e+00> : vector<8x64xf32>
    %7 = tpu.matmul %0, %1, %cst_7 {dimension_numbers = #tpu.dot_dimension_numbers<[1], [0], [0], [1], [0, 0, 1, 1], [], []>} : vector<8x32xf32>, vector<32x64xf32>, vector<8x64xf32> -> vector<8x64xf32>
    %8 = vector.broadcast %6 : vector<8x1xf32> to vector<8x64xf32>
    %9 = vector.broadcast %2 : vector<1x64xf32> to vector<8x64xf32>
    %10 = arith.addf %8, %9 : vector<8x64xf32>
    %cst_8 = arith.constant 2.000000e+00 : f32
    %11 = vector.broadcast %cst_8 : f32 to vector<8x64xf32>
    %12 = arith.mulf %11, %7 : vector<8x64xf32>
    %13 = arith.subf %10, %12 : vector<8x64xf32>
    %14 = tpu.iota {dimensions = array<i32: 1>} : vector<8x64xi32>
    %cst_9 = arith.constant 0.000000e+00 : f32
    %15 = vector.broadcast %cst_9 : f32 to vector<8x64xf32>
    %cst_10 = arith.constant dense<0x7F800000> : vector<8xf32>
    %16 = vector.multi_reduction <minimumf>, %13, %cst_10 [1] : vector<8x64xf32> to vector<8xf32>
    %17 = vector.shape_cast %16 : vector<8xf32> to vector<8x1xf32>
    %18 = vector.broadcast %17 : vector<8x1xf32> to vector<8x64xf32>
    %19 = arith.cmpf oeq, %13, %18 : vector<8x64xf32>
    %c64_i32 = arith.constant 64 : i32
    %20 = vector.broadcast %c64_i32 : i32 to vector<8x64xi32>
    %21 = arith.select %19, %14, %20 : vector<8x64xi1>, vector<8x64xi32>
    %cst_11 = arith.constant dense<2147483647> : vector<8xi32>
    %22 = vector.multi_reduction <minsi>, %21, %cst_11 [1] : vector<8x64xi32> to vector<8xi32>
    %23 = vector.shape_cast %22 : vector<8xi32> to vector<8x1xi32>
    %24 = vector.broadcast %23 : vector<8x1xi32> to vector<8x64xi32>
    %25 = arith.cmpi eq, %14, %24 : vector<8x64xi32>
    %26 = arith.extui %25 : vector<8x64xi1> to vector<8x64xi32>
    %27 = arith.sitofp %26 : vector<8x64xi32> to vector<8x64xf32>
    %28 = arith.addf %15, %27 : vector<8x64xf32>
    %cst_12 = arith.constant 0x7F800000 : f32
    %29 = vector.broadcast %cst_12 : f32 to vector<8x64xf32>
    %30 = arith.select %25, %29, %13 : vector<8x64xi1>, vector<8x64xf32>
    %cst_13 = arith.constant dense<0x7F800000> : vector<8xf32>
    %31 = vector.multi_reduction <minimumf>, %30, %cst_13 [1] : vector<8x64xf32> to vector<8xf32>
    %32 = vector.shape_cast %31 : vector<8xf32> to vector<8x1xf32>
    %33 = vector.broadcast %32 : vector<8x1xf32> to vector<8x64xf32>
    %34 = arith.cmpf oeq, %30, %33 : vector<8x64xf32>
    %c64_i32_14 = arith.constant 64 : i32
    %35 = vector.broadcast %c64_i32_14 : i32 to vector<8x64xi32>
    %36 = arith.select %34, %14, %35 : vector<8x64xi1>, vector<8x64xi32>
    %cst_15 = arith.constant dense<2147483647> : vector<8xi32>
    %37 = vector.multi_reduction <minsi>, %36, %cst_15 [1] : vector<8x64xi32> to vector<8xi32>
    %38 = vector.shape_cast %37 : vector<8xi32> to vector<8x1xi32>
    %39 = vector.broadcast %38 : vector<8x1xi32> to vector<8x64xi32>
    %40 = arith.cmpi eq, %14, %39 : vector<8x64xi32>
    %41 = arith.extui %40 : vector<8x64xi1> to vector<8x64xi32>
    %42 = arith.sitofp %41 : vector<8x64xi32> to vector<8x64xf32>
    %43 = arith.addf %28, %42 : vector<8x64xf32>
    %cst_16 = arith.constant 0x7F800000 : f32
    %44 = vector.broadcast %cst_16 : f32 to vector<8x64xf32>
    %45 = arith.select %40, %44, %30 : vector<8x64xi1>, vector<8x64xf32>
    %cst_17 = arith.constant dense<0x7F800000> : vector<8xf32>
    %46 = vector.multi_reduction <minimumf>, %45, %cst_17 [1] : vector<8x64xf32> to vector<8xf32>
    %47 = vector.shape_cast %46 : vector<8xf32> to vector<8x1xf32>
    %48 = vector.broadcast %47 : vector<8x1xf32> to vector<8x64xf32>
    %49 = arith.cmpf oeq, %45, %48 : vector<8x64xf32>
    %c64_i32_18 = arith.constant 64 : i32
    %50 = vector.broadcast %c64_i32_18 : i32 to vector<8x64xi32>
    %51 = arith.select %49, %14, %50 : vector<8x64xi1>, vector<8x64xi32>
    %cst_19 = arith.constant dense<2147483647> : vector<8xi32>
    %52 = vector.multi_reduction <minsi>, %51, %cst_19 [1] : vector<8x64xi32> to vector<8xi32>
    %53 = vector.shape_cast %52 : vector<8xi32> to vector<8x1xi32>
    %54 = vector.broadcast %53 : vector<8x1xi32> to vector<8x64xi32>
    %55 = arith.cmpi eq, %14, %54 : vector<8x64xi32>
    %56 = arith.extui %55 : vector<8x64xi1> to vector<8x64xi32>
    %57 = arith.sitofp %56 : vector<8x64xi32> to vector<8x64xf32>
    %58 = arith.addf %43, %57 : vector<8x64xf32>
    %cst_20 = arith.constant 0x7F800000 : f32
    %59 = vector.broadcast %cst_20 : f32 to vector<8x64xf32>
    %60 = arith.select %55, %59, %45 : vector<8x64xi1>, vector<8x64xf32>
    %cst_21 = arith.constant dense<0x7F800000> : vector<8xf32>
    %61 = vector.multi_reduction <minimumf>, %60, %cst_21 [1] : vector<8x64xf32> to vector<8xf32>
    %62 = vector.shape_cast %61 : vector<8xf32> to vector<8x1xf32>
    %63 = vector.broadcast %62 : vector<8x1xf32> to vector<8x64xf32>
    %64 = arith.cmpf oeq, %60, %63 : vector<8x64xf32>
    %c64_i32_22 = arith.constant 64 : i32
    %65 = vector.broadcast %c64_i32_22 : i32 to vector<8x64xi32>
    %66 = arith.select %64, %14, %65 : vector<8x64xi1>, vector<8x64xi32>
    %cst_23 = arith.constant dense<2147483647> : vector<8xi32>
    %67 = vector.multi_reduction <minsi>, %66, %cst_23 [1] : vector<8x64xi32> to vector<8xi32>
    %68 = vector.shape_cast %67 : vector<8xi32> to vector<8x1xi32>
    %69 = vector.broadcast %68 : vector<8x1xi32> to vector<8x64xi32>
    %70 = arith.cmpi eq, %14, %69 : vector<8x64xi32>
    %71 = arith.extui %70 : vector<8x64xi1> to vector<8x64xi32>
    %72 = arith.sitofp %71 : vector<8x64xi32> to vector<8x64xf32>
    %73 = arith.addf %58, %72 : vector<8x64xf32>
    %cst_24 = arith.constant 0x7F800000 : f32
    %74 = vector.broadcast %cst_24 : f32 to vector<8x64xf32>
    %75 = arith.select %70, %74, %60 : vector<8x64xi1>, vector<8x64xf32>
    %cst_25 = arith.constant dense<0x7F800000> : vector<8xf32>
    %76 = vector.multi_reduction <minimumf>, %75, %cst_25 [1] : vector<8x64xf32> to vector<8xf32>
    %77 = vector.shape_cast %76 : vector<8xf32> to vector<8x1xf32>
    %78 = vector.broadcast %77 : vector<8x1xf32> to vector<8x64xf32>
    %79 = arith.cmpf oeq, %75, %78 : vector<8x64xf32>
    %c64_i32_26 = arith.constant 64 : i32
    %80 = vector.broadcast %c64_i32_26 : i32 to vector<8x64xi32>
    %81 = arith.select %79, %14, %80 : vector<8x64xi1>, vector<8x64xi32>
    %cst_27 = arith.constant dense<2147483647> : vector<8xi32>
    %82 = vector.multi_reduction <minsi>, %81, %cst_27 [1] : vector<8x64xi32> to vector<8xi32>
    %83 = vector.shape_cast %82 : vector<8xi32> to vector<8x1xi32>
    %84 = vector.broadcast %83 : vector<8x1xi32> to vector<8x64xi32>
    %85 = arith.cmpi eq, %14, %84 : vector<8x64xi32>
    %86 = arith.extui %85 : vector<8x64xi1> to vector<8x64xi32>
    %87 = arith.sitofp %86 : vector<8x64xi32> to vector<8x64xf32>
    %88 = arith.addf %73, %87 : vector<8x64xf32>
    %cst_28 = arith.constant dense<0.000000e+00> : vector<8x128xf32>
    %89 = tpu.matmul %88, %3, %cst_28 {dimension_numbers = #tpu.dot_dimension_numbers<[1], [0], [0], [1], [0, 0, 1, 1], [], []>} : vector<8x64xf32>, vector<64x128xf32>, vector<8x128xf32> -> vector<8x128xf32>
    %cst_29 = arith.constant dense<0.000000e+00> : vector<8xf32>
    %90 = vector.multi_reduction <add>, %89, %cst_29 [1] : vector<8x128xf32> to vector<8xf32>
    %91 = vector.shape_cast %90 : vector<8xf32> to vector<8x1xf32>
    %cst_30 = arith.constant 0.000000e+00 : f32
    %92 = vector.broadcast %cst_30 : f32 to vector<8x1xf32>
    %93 = arith.cmpf oeq, %91, %92 : vector<8x1xf32>
    %cst_31 = arith.constant 1.000000e+00 : f32
    %94 = vector.broadcast %cst_31 : f32 to vector<8x1xf32>
    %95 = arith.select %93, %94, %91 : vector<8x1xi1>, vector<8x1xf32>
    %96 = tpu.reciprocal %95 {approx = true} : vector<8x1xf32> -> vector<8x1xf32>
    %97 = vector.broadcast %96 : vector<8x1xf32> to vector<8x128xf32>
    %98 = arith.mulf %89, %97 : vector<8x128xf32>
    %c0_32 = arith.constant 0 : index
    %c0_33 = arith.constant 0 : index
    %99 = vector.load %arg5[%c0_32, %c0_33] : memref<8x128xf32, #tpu.memory_space<vmem>>, vector<8x128xf32>
    tpu.vector_store %arg5[%c0_32, %c0_33], %98 {strides = array<i32>} : memref<8x128xf32, #tpu.memory_space<vmem>>, vector<8x128xf32>,
    %100 = tpu.iota {dimensions = array<i32: 1>} : vector<8x128xi32>
    %cst_34 = arith.constant dense<0xFF800000> : vector<8xf32>
    %101 = vector.multi_reduction <maximumf>, %98, %cst_34 [1] : vector<8x128xf32> to vector<8xf32>
    %102 = vector.shape_cast %101 : vector<8xf32> to vector<8x1xf32>
    %103 = vector.broadcast %102 : vector<8x1xf32> to vector<8x128xf32>
    %104 = arith.cmpf oeq, %98, %103 : vector<8x128xf32>
    %c128_i32 = arith.constant 128 : i32
    %105 = vector.broadcast %c128_i32 : i32 to vector<8x128xi32>
    %106 = arith.select %104, %100, %105 : vector<8x128xi1>, vector<8x128xi32>
    %cst_35 = arith.constant dense<2147483647> : vector<8xi32>
    %107 = vector.multi_reduction <minsi>, %106, %cst_35 [1] : vector<8x128xi32> to vector<8xi32>
    %108 = vector.shape_cast %107 : vector<8xi32> to vector<8x1xi32>
    %c0_36 = arith.constant 0 : index
    %c0_37 = arith.constant 0 : index
    %109 = vector.load %arg6[%c0_36, %c0_37] : memref<8x1xi32, #tpu.memory_space<vmem>>, vector<8x1xi32>
    tpu.vector_store %arg6[%c0_36, %c0_37], %108 {strides = array<i32>} : memref<8x1xi32, #tpu.memory_space<vmem>>, vector<8x1xi32>,
    return
  }
  func.func @transform_0(%arg0: i32) -> (i32, i32) {
    %c0_i32 = arith.constant 0 : i32
    %c0_i32_0 = arith.constant 0 : i32
    return %arg0, %c0_i32 : i32, i32
  }
  func.func @transform_1(%arg0: i32) -> (i32, i32) {
    %c0_i32 = arith.constant 0 : i32
    %c0_i32_0 = arith.constant 0 : i32
    %c0_i32_1 = arith.constant 0 : i32
    return %c0_i32, %c0_i32_0 : i32, i32
  }
  func.func @transform_2(%arg0: i32) -> (i32, i32) {
    %c0_i32 = arith.constant 0 : i32
    %c0_i32_0 = arith.constant 0 : i32
    %c0_i32_1 = arith.constant 0 : i32
    return %c0_i32, %c0_i32_0 : i32, i32
  }
  func.func @transform_3(%arg0: i32) -> (i32, i32) {
    %c0_i32 = arith.constant 0 : i32
    %c0_i32_0 = arith.constant 0 : i32
    %c0_i32_1 = arith.constant 0 : i32
    return %c0_i32, %c0_i32_0 : i32, i32
  }
  func.func @transform_4(%arg0: i32) -> (i32, i32) {
    %c0_i32 = arith.constant 0 : i32
    %c0_i32_0 = arith.constant 0 : i32
    return %arg0, %c0_i32 : i32, i32
  }
  func.func @transform_5(%arg0: i32) -> (i32, i32) {
    %c0_i32 = arith.constant 0 : i32
    %c0_i32_0 = arith.constant 0 : i32
    return %arg0, %c0_i32 : i32, i32
  }
}

</mosaic_0001>

<bundles_post_ra>
// kernel: tpu_custom_call.1
= control target key start
LH: loop header
LB: loop body
LE: loop exit
PB: predicated region body
PF: predicated region fallthrough
CT: control target
= control target key end

     0   :  { %11 = vsyncpa [#allocation3], 0  ;;  %s722_s0 = inlined_call_operand.hbm [shape: f32[8,32], index: 0, kind: input, shape index: {}]   ;;  %s723_s1 = inlined_call_operand.hbm [shape: f32[32,64], index: 1, kind: input, shape index: {}]   ;;  %s724_s2 = inlined_call_operand.vmem [shape: f32[1,64], index: 2, kind: input, shape index: {}]   ;;  %s725_s3 = inlined_call_operand.hbm [shape: f32[64,128], index: 3, kind: input, shape index: {}]   ;;  %s726_s4 = inlined_call_operand.hbm [shape: f32[8,128], index: 4, kind: output, shape index: {0}]   ;;  %s727_s5 = inlined_call_operand.vmem [shape: s32[8,1], index: 5, kind: output, shape index: {1}]  }
   0x1   :  { %12 = vsyncpa [#allocation6], 0 }
   0x2   :  { %13 = vsyncpa [#allocation4], 0  ;;  %s582_s18 = smov [#allocation5]   ;;  %s488_s22 = scalar_lea.hbm %s723_s1, 512 }
   0x3   :  { %s29_s19 = sshll.u32 %s582_s18, 4  ;;  %p489_p0 = scmp.ne.s32.totalorder %s723_s1, %s488_s22  ;;  %s30_s19 = int_to_ptr.vmem [resolvable:$true] %s29_s19 }
   0x4   :  { %p492_p1 = scmp.lt.u32.totalorder %s488_s22, %s723_s1 }
   0x6   :  { %p494_p2 = pnand %p492_p1, %p489_p0 }
   0x8   :  { %497 = shalt.err (!%p494_p2)
}
   0x9   :  { %s498_s27 = scalar_lea.vmem %s30_s19, 512  ;;  %p503_p4 = scmp.lt.s32.totalorder %s30_s19, %s30_s19 }
   0xa   :  { %p499_p3 = scmp.ne.s32.totalorder %s30_s19, %s498_s27  ;;  %p504_p5 = scmp.lt.s32.totalorder %s498_s27, %s498_s27 }
   0xc   :  { %p505_p6 = por %p504_p5, %p503_p4 }
   0xe   :  { %p506_p7 = pnand %p505_p6, %p499_p3 }
  0x10   :  { %509 = shalt.err (!%p506_p7)
}
  0x11   :  { %s583_s28 = smov 128   ;;  %s584_s29 = smov 8  }
  0x12   :  { %35 = dma.hbm_to_vmem [thread:$0]  %s723_s1, 512, %s30_s19, [#allocation6], %s583_s28, %s583_s28, %s584_s29  }
  0x13   :  { %s585_s7 = smov [#allocation2]   ;;  %s586_s9 = smov [#allocation7]  }
  0x14   :  { %s20_s8 = sshll.u32 %s585_s7, 4  ;;  %s43_s10 = sshll.u32 %s586_s9, 4  ;;  %s21_s8 = int_to_ptr.vmem [resolvable:$true] %s20_s8  ;;  %s44_s10 = int_to_ptr.vmem [resolvable:$true] %s43_s10 }
  0x15   :  { %s510_s13 = scalar_lea.hbm %s722_s0, 128 }
  0x16   :  { %p511_p8 = scmp.ne.s32.totalorder %s722_s0, %s510_s13  ;;  %p514_p9 = scmp.lt.u32.totalorder %s510_s13, %s722_s0 }
  0x18   :  { %p516_p10 = pnand %p514_p9, %p511_p8 }
  0x1a   :  { %519 = shalt.err (!%p516_p10)
}
  0x1b   :  { %s520_s1 = scalar_lea.vmem %s21_s8, 128  ;;  %p525_p12 = scmp.lt.s32.totalorder %s21_s8, %s21_s8 }
  0x1c   :  { %p521_p11 = scmp.ne.s32.totalorder %s21_s8, %s520_s1  ;;  %p526_p13 = scmp.lt.s32.totalorder %s520_s1, %s520_s1 }
  0x1e   :  { %p527_p0 = por %p526_p13, %p525_p12 }
  0x20   :  { %p528_p1 = pnand %p527_p0, %p521_p11 }
  0x22   :  { %531 = shalt.err (!%p528_p1)
}
  0x23   :  { %23 = dma.hbm_to_vmem [thread:$0]  %s722_s0, 128, %s21_s8, [#allocation3]  }
  0x24   :  { %s532_s22 = scalar_lea.hbm %s725_s3, 1024 }
  0x25   :  { %p533_p2 = scmp.ne.s32.totalorder %s725_s3, %s532_s22  ;;  %p536_p3 = scmp.lt.u32.totalorder %s532_s22, %s725_s3 }
  0x27   :  { %p538_p4 = pnand %p536_p3, %p533_p2 }
  0x29   :  { %541 = shalt.err (!%p538_p4)
}
  0x2a   :  { %s542_s27 = scalar_lea.vmem %s44_s10, 1024  ;;  %p547_p6 = scmp.lt.s32.totalorder %s44_s10, %s44_s10 }
  0x2b   :  { %p543_p5 = scmp.ne.s32.totalorder %s44_s10, %s542_s27  ;;  %p548_p7 = scmp.lt.s32.totalorder %s542_s27, %s542_s27 }
  0x2d   :  { %p549_p8 = por %p548_p7, %p547_p6 }
  0x2f   :  { %p550_p9 = pnand %p549_p8, %p543_p5 }
  0x31   :  { %553 = shalt.err (!%p550_p9)
}
  0x32   :  { %49 = dma.hbm_to_vmem [thread:$0]  %s725_s3, 1024, %s44_s10, [#allocation6], %s583_s28, %s583_s28, %s584_s29  }
  0x33   :  { %576 = dma.done.wait [#allocation3], 128  }
  0x34   :  { %577 = vsyncadd [#allocation3], 4294967168 }
  0x35   :  { %578 = dma.done.wait [#allocation6], 1536  }
  0x36   :  { %579 = vsyncadd [#allocation6], 4294965760  ;;  %v587_v0 = vmov 0.0|0.0   ;;  %vm588_vm0 = vmmov 0   ;;  %v589_v1 = vmov 0.0   ;;  %v60_v2 = vld [vmem:[#allocation5] sm:$0xff]  ;;  %v160_v19 = vlaneseq }
  0x37   :  { %459 = vmatprep.subr.bf16.mxu0 %v587_v0  ;;  %437 = vmatprep.mubr.msk.f32.mxu0 %vm588_vm0, %v589_v1  ;;  %v61_v3 = vld [vmem:[#allocation5 + $0x8] sm:$0xff]  ;;  %v62_v4 = vld [vmem:[#allocation5 + $0x10] sm:$0xff]  ;;  %v63_v6 = vld [vmem:[#allocation5 + $0x18] sm:$0xff]  ;;  %vm74_vm1 = vcmask 261120   ;;  %vm162_vm2 = vcmask 523264  }
  0x38   :  { %465 = vmatprep.subr.bf16.mxu1 %v587_v0  ;;  %456 = vmatprep.mubr.msk.f32.mxu1 %vm588_vm0, %v589_v1  ;;  %v460_v5 = vpack.c.bf16 %v61_v3, %v60_v2  ;;  %v59_v7 = vld [vmem:[#allocation2] sm:$0xff]  ;;  %v463_v9 = vpack.c.bf16 %v63_v6, %v62_v4  ;;  %v672_v20 = vand.u32 127, %v160_v19 }
  0x39   :  { %v73_v8 = vmul.f32 %v59_v7, %v59_v7  ;;  %v408_v11 = vld [vmem:[%s724_s2] ss:$0 sm:$0xff]  ;;  %s590_s2 = smov [#allocation8]  }
  0x3a   :  { %461 = vmatpush3.bf16.msra.mxu0 %v460_v5  ;;  %s393_s29 = sshll.u32 %s590_s2, 4  ;;  %s394_s29 = int_to_ptr.vmem [resolvable:$true] %s393_s29 }
  0x3b   :  { %462 = vmatprep.subr.bf16.mxu0 %v587_v0  ;;  %v75_v10 = vsel %vm74_vm1, %v73_v8, 0.0  ;;  %s554_s6 = scalar_lea.vmem %s394_s29, 128  ;;  %p559_p11 = scmp.lt.s32.totalorder %s394_s29, %s394_s29 }
  0x3c   :  { %76 = vadd.xlane.f32.xlu0 %v75_v10  ;;  %p555_p10 = scmp.ne.s32.totalorder %s394_s29, %s554_s6  ;;  %p560_p12 = scmp.lt.s32.totalorder %s554_s6, %s554_s6 }
  0x3e   :  { %464 = vmatpush3.bf16.msra.mxu0 %v463_v9  ;;  %p561_p13 = por %p560_p12, %p559_p11 }
  0x40   :  { %p562_p0 = pnand %p561_p13, %p555_p10 }
  0x41   :  { %438 = vmatmul.mubr.msk.f32.vlgmr.msra.gmra.mrb[0].mxu0 %vm74_vm1, %v59_v7 }
  0xc9   :  { %v77_v12 = vpop.xlane.xlu0 %76 }
  0xca   :  { %v157_v13 = vadd.f32 %v408_v11, %v77_v12 }
 0x114   :  { %v147_v14 = vpop.f32.mrb[0].mxu0 }
 0x115   :  { %v158_v15 = vmul.f32 2.0, %v147_v14  ;;  %v439_v16 = vpop.f32.mrb[1].mxu0 }
 0x117   :  { %v159_v17 = vsub.f32 %v157_v13, %v158_v15 }
 0x119   :  { %v163_v18 = vsel %vm162_vm2, %v159_v17, inf }
 0x11a   :  { %164 = vmin.xlane.f32.xlu0 %v163_v18 }
 0x1a7   :  { %v165_v21 = vpop.xlane.xlu0 %164 }
 0x1a8   :  { %vm166_vm3 = vcmp.eq.f32.partialorder %v159_v17, %v165_v21 }
 0x1a9   :  { %v167_v22 = vsel %vm166_vm3, %v672_v20, 64 }
 0x1aa   :  { %v168_v23 = vsel %vm162_vm2, %v167_v22, 2147483647 }
 0x1ab   :  { %v170_v24 = vshra.s32 %v168_v23, 16  ;;  %v169_v26 = vand.u32 65535, %v168_v23 }
 0x1ad   :  { %v172_v25 = vcvt.s32.f32 %v170_v24  ;;  %v171_v28 = vcvt.s32.f32 %v169_v26 }
 0x1af   :  { %173 = vmin.xlane.f32.xlu1 %v172_v25 }
 0x23c   :  { %v174_v27 = vpop.xlane.xlu1 %173 }
 0x23d   :  { %vm175_vm4 = vcmp.eq.f32.partialorder %v172_v25, %v174_v27  ;;  %v180_v30 = vcvt.f32.s32 %v174_v27 }
 0x23e   :  { %v176_v29 = vsel %vm175_vm4, %v171_v28, inf }
 0x23f   :  { %177 = vmin.xlane.f32.xlu1 %v176_v29  ;;  %v181_v32 = vshll.u32 %v180_v30, 16 }
 0x2cc   :  { %v178_v31 = vpop.xlane.xlu1 %177 }
 0x2cd   :  { %v179_v33 = vcvt.f32.s32 %v178_v31 }
 0x2cf   :  { %v182_v34 = vadd.s32 %v181_v32, %v179_v33 }
 0x2d1   :  { %vm183_vm5 = vcmp.eq.s32.totalorder %v672_v20, %v182_v34 }
 0x2d2   :  { %v187_v35 = vsel %vm183_vm5, inf, %v159_v17  ;;  %v409_v51 = vsel %vm183_vm5, 1.0, %v589_v1 }
 0x2d3   :  { %v188_v36 = vsel %vm162_vm2, %v187_v35, inf }
 0x2d4   :  { %189 = vmin.xlane.f32.xlu0 %v188_v36  ;;  %v65_v36 = vld [vmem:[#allocation7] sm:$0xff] }
 0x361   :  { %v190_v37 = vpop.xlane.xlu0 %189 }
 0x362   :  { %vm191_vm6 = vcmp.eq.f32.partialorder %v187_v35, %v190_v37  ;;  %v66_v37 = vld [vmem:[#allocation7 + $0x8] sm:$0xff] }
 0x363   :  { %v192_v38 = vsel %vm191_vm6, %v672_v20, 64 }
 0x364   :  { %v193_v39 = vsel %vm162_vm2, %v192_v38, 2147483647  ;;  %v67_v38 = vld [vmem:[#allocation7 + $0x10] sm:$0xff] }
 0x365   :  { %v195_v40 = vshra.s32 %v193_v39, 16  ;;  %v194_v42 = vand.u32 65535, %v193_v39  ;;  %v466_v39 = vpack.c.bf16 %v66_v37, %v65_v36 }
 0x367   :  { %v197_v41 = vcvt.s32.f32 %v195_v40  ;;  %v196_v44 = vcvt.s32.f32 %v194_v42  ;;  %v68_v40 = vld [vmem:[#allocation7 + $0x18] sm:$0xff]  ;;  %467 = vmatpush3.bf16.msra.mxu1 %v466_v39 }
 0x368   :  { %468 = vmatprep.subr.bf16.mxu1 %v587_v0 }
 0x369   :  { %198 = vmin.xlane.f32.xlu1 %v197_v41 }
 0x3f6   :  { %v199_v43 = vpop.xlane.xlu1 %198 }
 0x3f7   :  { %vm200_vm7 = vcmp.eq.f32.partialorder %v197_v41, %v199_v43  ;;  %v205_v46 = vcvt.f32.s32 %v199_v43  ;;  %v469_v41 = vpack.c.bf16 %v68_v40, %v67_v38 }
 0x3f8   :  { %v201_v45 = vsel %vm200_vm7, %v196_v44, inf }
 0x3f9   :  { %202 = vmin.xlane.f32.xlu0 %v201_v45  ;;  %v206_v48 = vshll.u32 %v205_v46, 16  ;;  %470 = vmatpush3.bf16.msra.mxu1 %v469_v41  ;;  %v69_v46 = vld [vmem:[#allocation7 + $0x20] sm:$0xff] }
 0x3fa   :  { %471 = vmatprep.subr.bf16.mxu1 %v587_v0 }
 0x486   :  { %v203_v47 = vpop.xlane.xlu0 %202 }
 0x487   :  { %v204_v49 = vcvt.f32.s32 %v203_v47  ;;  %v70_v47 = vld [vmem:[#allocation7 + $0x28] sm:$0xff] }
 0x489   :  { %v207_v50 = vadd.s32 %v206_v48, %v204_v49  ;;  %v472_v48 = vpack.c.bf16 %v70_v47, %v69_v46  ;;  %v71_v49 = vld [vmem:[#allocation7 + $0x30] sm:$0xff] }
 0x48b   :  { %vm208_vm8 = vcmp.eq.s32.totalorder %v672_v20, %v207_v50  ;;  %473 = vmatpush3.bf16.msra.mxu1 %v472_v48  ;;  %v72_v50 = vld [vmem:[#allocation7 + $0x38] sm:$0xff] }
 0x48c   :  { %v212_v52 = vsel %vm208_vm8, inf, %v187_v35  ;;  %v410_v53 = vsel %vm208_vm8, 1.0, %v589_v1  ;;  %474 = vmatprep.subr.bf16.mxu1 %v587_v0 }
 0x48d   :  { %v213_v54 = vsel %vm162_vm2, %v212_v52, inf  ;;  %v211_v55 = vadd.f32 %v410_v53, %v409_v51  ;;  %v475_v51 = vpack.c.bf16 %v72_v50, %v71_v49 }
 0x48e   :  { %214 = vmin.xlane.f32.xlu1 %v213_v54 }
 0x48f   :  { %476 = vmatpush3.bf16.msra.mxu1 %v475_v51 }
 0x51b   :  { %v215_v56 = vpop.xlane.xlu1 %214 }
 0x51c   :  { %vm216_vm9 = vcmp.eq.f32.partialorder %v212_v52, %v215_v56 }
 0x51d   :  { %v217_v57 = vsel %vm216_vm9, %v672_v20, 64 }
 0x51e   :  { %v218_v58 = vsel %vm162_vm2, %v217_v57, 2147483647 }
 0x51f   :  { %v220_v59 = vshra.s32 %v218_v58, 16  ;;  %v219_v61 = vand.u32 65535, %v218_v58 }
 0x521   :  { %v222_v60 = vcvt.s32.f32 %v220_v59  ;;  %v221_v63 = vcvt.s32.f32 %v219_v61 }
 0x523   :  { %223 = vmin.xlane.f32.xlu0 %v222_v60 }
 0x5b0   :  { %v224_v62 = vpop.xlane.xlu0 %223 }
 0x5b1   :  { %vm225_vm10 = vcmp.eq.f32.partialorder %v222_v60, %v224_v62  ;;  %v230_v3 = vcvt.f32.s32 %v224_v62 }
 0x5b2   :  { %v226_v2 = vsel %vm225_vm10, %v221_v63, inf }
 0x5b3   :  { %227 = vmin.xlane.f32.xlu1 %v226_v2  ;;  %v231_v5 = vshll.u32 %v230_v3, 16 }
 0x640   :  { %v228_v4 = vpop.xlane.xlu1 %227 }
 0x641   :  { %v229_v6 = vcvt.f32.s32 %v228_v4 }
 0x643   :  { %v232_v7 = vadd.s32 %v231_v5, %v229_v6 }
 0x645   :  { %vm233_vm11 = vcmp.eq.s32.totalorder %v672_v20, %v232_v7 }
 0x646   :  { %v237_v8 = vsel %vm233_vm11, inf, %v212_v52  ;;  %v411_v9 = vsel %vm233_vm11, 1.0, %v589_v1 }
 0x647   :  { %v238_v10 = vsel %vm162_vm2, %v237_v8, inf  ;;  %v236_v11 = vadd.f32 %v411_v9, %v211_v55 }
 0x648   :  { %239 = vmin.xlane.f32.xlu0 %v238_v10 }
 0x6d5   :  { %v240_v12 = vpop.xlane.xlu0 %239 }
 0x6d6   :  { %vm241_vm12 = vcmp.eq.f32.partialorder %v237_v8, %v240_v12 }
 0x6d7   :  { %v242_v13 = vsel %vm241_vm12, %v672_v20, 64 }
 0x6d8   :  { %v243_v14 = vsel %vm162_vm2, %v242_v13, 2147483647 }
 0x6d9   :  { %v245_v15 = vshra.s32 %v243_v14, 16  ;;  %v244_v17 = vand.u32 65535, %v243_v14 }
 0x6db   :  { %v247_v16 = vcvt.s32.f32 %v245_v15  ;;  %v246_v19 = vcvt.s32.f32 %v244_v17 }
 0x6dd   :  { %248 = vmin.xlane.f32.xlu1 %v247_v16 }
 0x76a   :  { %v249_v18 = vpop.xlane.xlu1 %248 }
 0x76b   :  { %vm250_vm13 = vcmp.eq.f32.partialorder %v247_v16, %v249_v18  ;;  %v255_v22 = vcvt.f32.s32 %v249_v18 }
 0x76c   :  { %v251_v21 = vsel %vm250_vm13, %v246_v19, inf }
 0x76d   :  { %252 = vmin.xlane.f32.xlu0 %v251_v21  ;;  %v256_v24 = vshll.u32 %v255_v22, 16 }
 0x7fa   :  { %v253_v23 = vpop.xlane.xlu0 %252 }
 0x7fb   :  { %v254_v25 = vcvt.f32.s32 %v253_v23 }
 0x7fd   :  { %v257_v26 = vadd.s32 %v256_v24, %v254_v25 }
 0x7ff   :  { %vm258_vm14 = vcmp.eq.s32.totalorder %v672_v20, %v257_v26 }
 0x800   :  { %v262_v27 = vsel %vm258_vm14, inf, %v237_v8  ;;  %v412_v28 = vsel %vm258_vm14, 1.0, %v589_v1 }
 0x801   :  { %v263_v29 = vsel %vm162_vm2, %v262_v27, inf  ;;  %v261_v30 = vadd.f32 %v412_v28, %v236_v11 }
 0x802   :  { %264 = vmin.xlane.f32.xlu1 %v263_v29 }
 0x88f   :  { %v265_v31 = vpop.xlane.xlu1 %264 }
 0x890   :  { %vm266_vm15 = vcmp.eq.f32.partialorder %v262_v27, %v265_v31 }
 0x891   :  { %v267_v32 = vsel %vm266_vm15, %v672_v20, 64 }
 0x892   :  { %v268_v33 = vsel %vm162_vm2, %v267_v32, 2147483647 }
 0x893   :  { %v270_v34 = vshra.s32 %v268_v33, 16  ;;  %v269_v42 = vand.u32 65535, %v268_v33 }
 0x895   :  { %v272_v35 = vcvt.s32.f32 %v270_v34  ;;  %v271_v44 = vcvt.s32.f32 %v269_v42 }
 0x897   :  { %273 = vmin.xlane.f32.xlu0 %v272_v35 }
 0x924   :  { %v274_v43 = vpop.xlane.xlu0 %273 }
 0x925   :  { %vm275_vm0 = vcmp.eq.f32.partialorder %v272_v35, %v274_v43  ;;  %v280_v52 = vcvt.f32.s32 %v274_v43 }
 0x926   :  { %v276_v45 = vsel %vm275_vm0, %v271_v44, inf }
 0x927   :  { %277 = vmin.xlane.f32.xlu1 %v276_v45  ;;  %v281_v54 = vshll.u32 %v280_v52, 16 }
 0x9b4   :  { %v278_v53 = vpop.xlane.xlu1 %277 }
 0x9b5   :  { %v279_v55 = vcvt.f32.s32 %v278_v53 }
 0x9b7   :  { %v282_v56 = vadd.s32 %v281_v54, %v279_v55 }
 0x9b9   :  { %vm283_vm1 = vcmp.eq.s32.totalorder %v672_v20, %v282_v56 }
 0x9ba   :  { %v413_v57 = vsel %vm283_vm1, 1.0, %v589_v1 }
 0x9bb   :  { %v286_v58 = vadd.f32 %v413_v57, %v261_v30 }
 0x9bd   :  { %457 = vmatmul.mubr.msk.f32.vlgmr.msra.gmra.mrb[0].mxu1 %vm162_vm2, %v286_v58 }
 0xa90   :  { %v356_v59 = vpop.f32.mrb[0].mxu1 }
 0xa91   :  { %360 = vadd.xlane.f32.xlu0 %v356_v59  ;;  %v458_v60 = vpop.f32.mrb[1].mxu1 }
 0xb1e   :  { %v361_v0 = vpop.xlane.xlu0 %360 }
 0xb1f   :  { %vm362_vm3 = vcmp.eq.f32.partialorder %v361_v0, 0.0 }
 0xb20   :  { %v363_v61 = vsel %vm362_vm3, 1.0, %v361_v0 }
 0xb21   :  { %486 = vrcp.f32 %v363_v61 }
 0xb2b   :  { %v487_v62 = vpop.eup %486 }
 0xb2c   :  { %v365_v63 = vmul.f32 %v487_v62, %v356_v59 }
 0xb2e   :  { %367 = vmax.xlane.f32.xlu1 %v365_v63  ;;  %366 = vst [vmem:[#allocation8] sm:$0xff] %v365_v63 }
 0xbbb   :  { %v368_v2 = vpop.xlane.xlu1 %367 }
 0xbbc   :  { %vm369_vm4 = vcmp.eq.f32.partialorder %v365_v63, %v368_v2 }
 0xbbd   :  { %v370_v3 = vsel %vm369_vm4, %v672_v20, 128 }
 0xbbe   :  { %v372_v4 = vshra.s32 %v370_v3, 16  ;;  %v371_v5 = vand.u32 65535, %v370_v3 }
 0xbc0   :  { %v374_v1 = vcvt.s32.f32 %v372_v4  ;;  %v373_v7 = vcvt.s32.f32 %v371_v5 }
 0xbc2   :  { %375 = vmin.xlane.f32.xlu0 %v374_v1 }
 0xc4f   :  { %v376_v6 = vpop.xlane.xlu0 %375 }
 0xc50   :  { %vm377_vm2 = vcmp.eq.f32.partialorder %v374_v1, %v376_v6 }
 0xc51   :  { %v378_v8 = vsel %vm377_vm2, %v373_v7, inf }
 0xc52   :  { %379 = vmin.xlane.f32.xlu1 %v378_v8 }
 0xc53   :  { %565 = shalt.err (!%p562_p0)
}
 0xc54   :  { %s566_s9 = scalar_lea.hbm %s726_s4, 128 }
 0xc55   :  { %p567_p1 = scmp.ne.s32.totalorder %s726_s4, %s566_s9  ;;  %p570_p2 = scmp.lt.u32.totalorder %s566_s9, %s726_s4 }
 0xc57   :  { %p572_p3 = pnand %p570_p2, %p567_p1 }
 0xc59   :  { %575 = shalt.err (!%p572_p3)
}
 0xc5a   :  { %396 = dma.vmem_to_hbm [thread:$0]  %s394_s29, 128, %s726_s4, [#allocation4]   ;;  %v382_v20 = vcvt.f32.s32 %v376_v6  ;;  %vm385_vm5 = vcmask 7168  }
 0xc5c   :  { %v383_v10 = vshll.u32 %v382_v20, 16 }
 0xcdf   :  { %v380_v9 = vpop.xlane.xlu1 %379 }
 0xce0   :  { %v381_v11 = vcvt.f32.s32 %v380_v9 }
 0xce2   :  { %v384_v12 = vadd.s32 %v383_v10, %v381_v11 }
 0xce4   :  { %386 = vst.msk [vmem:[%s727_s5] sm:$0xff] %vm385_vm5, %v384_v12 }
 0xce5   :  { %580 = dma.done.wait [#allocation4], 128  }
 0xce6   :  { %581 = vsyncadd [#allocation4], 4294967168 }
 0xce7   :  { %404 = vsyncpa [#allocation3], 1 }
 0xce8   :  { %405 = vsyncpa [#allocation6], 1 }
 0xce9   :  { %406 = vsyncpa [#allocation4], 1 }

</bundles_post_ra>
